<compile_context>
chip_gen: v6e
topology: v6e:2x2x1
jax: 0.10.0
libtpu: 0.0.40
codegen_flags: <defaults>
</compile_context>

<pallas_src>
import functools

import jax
import jax.numpy as jnp
from jax.experimental import pallas as pl
from jax.experimental.pallas import tpu as pltpu


def _round_up(n: int, m: int) -> int:
    return ((n + m - 1) // m) * m


# ----------------------------------------------------------------------------
# Fast path: weight panel resident in VMEM, single pass over x, fused L1 loss.
# ----------------------------------------------------------------------------
def _linear_l1_kernel(x_ref, w_ref, b_ref, y_ref, o_ref, loss_ref, *, mxu_dtype):
    xv = x_ref[...]
    wv = w_ref[...]
    if mxu_dtype is not None:  # optional reduced-precision MXU feed
        xv = xv.astype(mxu_dtype)
        wv = wv.astype(mxu_dtype)
    yh = jnp.dot(xv, wv, preferred_element_type=jnp.float32)
    yh = yh + b_ref[...].astype(jnp.float32)
    o_ref[...] = yh.astype(o_ref.dtype)
    # Fused predloss: mean(|y_hat - y|) over the (full) output axis.
    diff = jnp.abs(yh - y_ref[...].astype(jnp.float32))
    loss_ref[...] = jnp.mean(diff, axis=-1, keepdims=True)


def _linear_l1_fused(x2, y2, weight, bias2, *, tm=1024, mxu_dtype=None):
    M, L = x2.shape
    _, O = weight.shape

    # Row-tile size: a multiple of 8, capped so the double-buffered working
    # set (x, y, y_hat, loss rows) stays well inside the scoped-VMEM default
    # on every generation (v7x has only 64 MiB physical / 32 MiB default).
    bytes_per_row = 4 * (L + 2 * O + 1) * 2
    vmem_budget = 16 * 1024 * 1024
    tm_cap = max(8, (vmem_budget // max(bytes_per_row, 1)) // 8 * 8)
    tm = max(8, min(tm, tm_cap, _round_up(M, 8)))

    grid = (pl.cdiv(M, tm),)

    y_hat2, loss2 = pl.pallas_call(
        functools.partial(_linear_l1_kernel, mxu_dtype=mxu_dtype),
        out_shape=(
            jax.ShapeDtypeStruct((M, O), x2.dtype),
            jax.ShapeDtypeStruct((M, 1), jnp.float32),
        ),
        grid_spec=pltpu.PrefetchScalarGridSpec(
            num_scalar_prefetch=0,
            grid=grid,
            in_specs=[
                pl.BlockSpec((tm, L), lambda i: (i, 0)),  # x rows (streamed)
                pl.BlockSpec((L, O), lambda i: (0, 0)),   # weight (resident)
                pl.BlockSpec((1, O), lambda i: (0, 0)),   # bias   (resident)
                pl.BlockSpec((tm, O), lambda i: (i, 0)),  # y rows (streamed)
            ],
            out_specs=[
                pl.BlockSpec((tm, O), lambda i: (i, 0)),  # y_hat rows
                pl.BlockSpec((tm, 1), lambda i: (i, 0)),  # per-row L1 mean
            ],
        ),
        compiler_params=pltpu.CompilerParams(
            dimension_semantics=("parallel",),
        ),
    )(x2, weight, bias2, y2)
    return y_hat2, loss2


# ----------------------------------------------------------------------------
# Fallback path: K-tiled matmul for weights too large to hold in VMEM.
# ----------------------------------------------------------------------------
def _matmul_bias_kernel(x_ref, w_ref, b_ref, o_ref, acc_ref, *, mxu_dtype):
    k = pl.program_id(2)

    @pl.when(k == 0)
    def _():
        # Initialize the accumulator with the broadcast bias (saves the
        # epilogue add).
        acc_ref[...] = jnp.broadcast_to(
            b_ref[...].astype(jnp.float32), acc_ref.shape
        )

    xv = x_ref[...]
    wv = w_ref[...]
    if mxu_dtype is not None:
        xv = xv.astype(mxu_dtype)
        wv = wv.astype(mxu_dtype)
    acc_ref[...] += jnp.dot(xv, wv, preferred_element_type=jnp.float32)

    @pl.when(k == pl.num_programs(2) - 1)
    def _():
        o_ref[...] = acc_ref[...].astype(o_ref.dtype)


def _linear_ktiled(x2, weight, bias2, *, tm=512, to=512, tk=512, mxu_dtype=None):
    M, L = x2.shape
    _, O = weight.shape

    tm = max(8, min(tm, _round_up(M, 8)))
    to = min(to, _round_up(O, 128))
    tk = min(tk, _round_up(L, 128))

    # Zero-pad ONLY the contraction axis (garbage along L would corrupt the
    # accumulation); ragged M/O edge blocks are safe because their garbage
    # lands only in masked-out output rows/cols.
    L_pad = _round_up(L, tk)
    if L_pad != L:
        x2 = jnp.pad(x2, ((0, 0), (0, L_pad - L)))
        weight = jnp.pad(weight, ((0, L_pad - L), (0, 0)))

    grid = (pl.cdiv(M, tm), pl.cdiv(O, to), L_pad // tk)

    return pl.pallas_call(
        functools.partial(_matmul_bias_kernel, mxu_dtype=mxu_dtype),
        out_shape=jax.ShapeDtypeStruct((M, O), x2.dtype),
        grid_spec=pltpu.PrefetchScalarGridSpec(
            num_scalar_prefetch=0,
            grid=grid,
            in_specs=[
                pl.BlockSpec((tm, tk), lambda i, j, k: (i, k)),
                pl.BlockSpec((tk, to), lambda i, j, k: (k, j)),
                pl.BlockSpec((1, to), lambda i, j, k: (0, j)),
            ],
            out_specs=pl.BlockSpec((tm, to), lambda i, j, k: (i, j)),
            scratch_shapes=[pltpu.VMEM((tm, to), jnp.float32)],
        ),
        compiler_params=pltpu.CompilerParams(
            dimension_semantics=("parallel", "parallel", "arbitrary"),
        ),
    )(x2, weight, bias2)


# ----------------------------------------------------------------------------
# Forward pass mirroring Model.forward.
# ----------------------------------------------------------------------------
def forward(x, y, weight, bias, eps=1e-5, mxu_dtype=None):
    B, C, L = x.shape
    Lw, O = weight.shape
    assert L == Lw, (L, Lw)
    M = B * C

    x2 = x.reshape(M, L)          # (B, C, L) is contiguous -> free reshape
    y2 = y.reshape(M, O)
    b2 = bias.reshape(1, O)

    # Use the single-pass fused kernel whenever the (L, O) weight panel fits
    # comfortably in VMEM (covers all realistic configurations of this module).
    weight_bytes = L * O * jnp.dtype(weight.dtype).itemsize
    if weight_bytes <= 8 * 1024 * 1024:
        y_hat2, loss2 = _linear_l1_fused(x2, y2, weight, b2, mxu_dtype=mxu_dtype)
        predloss = loss2.reshape(B, C).astype(x.dtype)
    else:
        y_hat2 = _linear_ktiled(x2, weight, b2, mxu_dtype=mxu_dtype)
        predloss = jnp.abs(y_hat2 - y2).mean(axis=-1).reshape(B, C)

    y_hat = y_hat2.reshape(B, C, O)

    result = {}
    result["y_hat"] = y_hat
    result["predloss"] = predloss
    # F.l1_loss(zeros_like(x), zeros_like(x)).mean(-1) == zeros of shape (B, C)
    result["recloss"] = jnp.zeros((B, C), dtype=x.dtype)
    # (mse(0, W).mean(-1) ** 0.5).mean() -- tiny reduction, plain JAX.
    result["normloss"] = jnp.sqrt(
        (weight.astype(jnp.float32) ** 2).mean(axis=-1)
    ).mean().astype(weight.dtype)
    return result


if __name__ == "__main__":
    key = jax.random.PRNGKey(0)
    kx, ky, kw = jax.random.split(key, 3)

    # Small shapes consistent with the module: batch=2, channels=4,
    # input_len=16, output_len=32.
    B, C, L, O = 2, 4, 16, 32

    x = jax.random.normal(kx, (B, C, L), dtype=jnp.float32)
    y = jax.random.normal(ky, (B, C, O), dtype=jnp.float32)
    # xavier_normal_ init for weight, zeros for bias (as in __init__).
    std = (2.0 / (L + O)) ** 0.5
    weight = std * jax.random.normal(kw, (L, O), dtype=jnp.float32)
    bias = jnp.zeros((O,), dtype=jnp.float32)

    result = jax.jit(forward)(x, y, weight, bias)
    result = jax.block_until_ready(result)

    # Correctness check against a plain-JAX reference of the forward pass.
    ref_y_hat = jnp.einsum("bcl,lo->bco", x, weight) + bias
    assert result["y_hat"].shape == (B, C, O)
    assert jnp.allclose(result["y_hat"], ref_y_hat, atol=1e-5, rtol=1e-5)
    assert jnp.allclose(
        result["predloss"], jnp.abs(ref_y_hat - y).mean(-1), atol=1e-5, rtol=1e-5
    )
    assert result["recloss"].shape == (B, C)
    assert jnp.allclose(result["recloss"], 0.0)
    assert jnp.allclose(
        result["normloss"],
        jnp.sqrt((weight ** 2).mean(-1)).mean(),
        atol=1e-6,
        rtol=1e-6,
    )

    print("KERNEL_OK")
</pallas_src>

<mosaic_0001>
module attributes {stable_mosaic.version = 11 : i64} {
  func.func @_linear_l1_kernel(%arg0: i32, %arg1: memref<8x16xf32, #tpu.memory_space<vmem>>, %arg2: memref<16x32xf32, #tpu.memory_space<vmem>>, %arg3: memref<1x32xf32, #tpu.memory_space<vmem>>, %arg4: memref<8x32xf32, #tpu.memory_space<vmem>>, %arg5: memref<8x32xf32, #tpu.memory_space<vmem>>, %arg6: memref<8x1xf32, #tpu.memory_space<vmem>>) attributes {dimension_semantics = [#tpu.dimension_semantics<parallel>], iteration_bounds = array<i64: 1>, scalar_prefetch = 0 : i64, scratch_operands = 0 : i64, tpu.core_type = #tpu.core_type<tc>, window_params = [{transform_indices = @transform_0, window_bounds = array<i64: 8, 16>}, {pipeline_mode = #tpu.pipeline_mode<synchronous>, transform_indices = @transform_1, window_bounds = array<i64: 16, 32>}, {pipeline_mode = #tpu.pipeline_mode<synchronous>, transform_indices = @transform_2, window_bounds = array<i64: 1, 32>}, {transform_indices = @transform_3, window_bounds = array<i64: 8, 32>}, {transform_indices = @transform_4, window_bounds = array<i64: 8, 32>}, {transform_indices = @transform_5, window_bounds = array<i64: 8, 1>}]} {
    %c0 = arith.constant 0 : index
    %c0_0 = arith.constant 0 : index
    %0 = vector.load %arg1[%c0, %c0_0] : memref<8x16xf32, #tpu.memory_space<vmem>>, vector<8x16xf32>
    %c0_1 = arith.constant 0 : index
    %c0_2 = arith.constant 0 : index
    %1 = vector.load %arg2[%c0_1, %c0_2] : memref<16x32xf32, #tpu.memory_space<vmem>>, vector<16x32xf32>
    %cst = arith.constant dense<0.000000e+00> : vector<8x32xf32>
    %2 = tpu.matmul %0, %1, %cst {dimension_numbers = #tpu.dot_dimension_numbers<[1], [0], [0], [1], [0, 0, 1, 1], [], []>} : vector<8x16xf32>, vector<16x32xf32>, vector<8x32xf32> -> vector<8x32xf32>
    %c0_3 = arith.constant 0 : index
    %c0_4 = arith.constant 0 : index
    %3 = vector.load %arg3[%c0_3, %c0_4] : memref<1x32xf32, #tpu.memory_space<vmem>>, vector<1x32xf32>
    %4 = vector.broadcast %3 : vector<1x32xf32> to vector<8x32xf32>
    %5 = arith.addf %2, %4 : vector<8x32xf32>
    %c0_5 = arith.constant 0 : index
    %c0_6 = arith.constant 0 : index
    %6 = vector.load %arg5[%c0_5, %c0_6] : memref<8x32xf32, #tpu.memory_space<vmem>>, vector<8x32xf32>
    tpu.vector_store %arg5[%c0_5, %c0_6], %5 {strides = array<i32>} : memref<8x32xf32, #tpu.memory_space<vmem>>, vector<8x32xf32>,
    %c0_7 = arith.constant 0 : index
    %c0_8 = arith.constant 0 : index
    %7 = vector.load %arg4[%c0_7, %c0_8] : memref<8x32xf32, #tpu.memory_space<vmem>>, vector<8x32xf32>
    %8 = arith.subf %5, %7 : vector<8x32xf32>
    %9 = math.absf %8 : vector<8x32xf32>
    %cst_9 = arith.constant dense<0.000000e+00> : vector<8xf32>
    %10 = vector.multi_reduction <add>, %9, %cst_9 [1] : vector<8x32xf32> to vector<8xf32>
    %11 = vector.shape_cast %10 : vector<8xf32> to vector<8x1xf32>
    %cst_10 = arith.constant 3.200000e+01 : f32
    %12 = vector.broadcast %cst_10 : f32 to vector<8x1xf32>
    %13 = arith.divf %11, %12 : vector<8x1xf32>
    %c0_11 = arith.constant 0 : index
    %c0_12 = arith.constant 0 : index
    %14 = vector.load %arg6[%c0_11, %c0_12] : memref<8x1xf32, #tpu.memory_space<vmem>>, vector<8x1xf32>
    tpu.vector_store %arg6[%c0_11, %c0_12], %13 {strides = array<i32>} : memref<8x1xf32, #tpu.memory_space<vmem>>, vector<8x1xf32>,
    return
  }
  func.func @transform_0(%arg0: i32) -> (i32, i32) {
    %c0_i32 = arith.constant 0 : i32
    %c0_i32_0 = arith.constant 0 : i32
    return %arg0, %c0_i32 : i32, i32
  }
  func.func @transform_1(%arg0: i32) -> (i32, i32) {
    %c0_i32 = arith.constant 0 : i32
    %c0_i32_0 = arith.constant 0 : i32
    %c0_i32_1 = arith.constant 0 : i32
    return %c0_i32, %c0_i32_0 : i32, i32
  }
  func.func @transform_2(%arg0: i32) -> (i32, i32) {
    %c0_i32 = arith.constant 0 : i32
    %c0_i32_0 = arith.constant 0 : i32
    %c0_i32_1 = arith.constant 0 : i32
    return %c0_i32, %c0_i32_0 : i32, i32
  }
  func.func @transform_3(%arg0: i32) -> (i32, i32) {
    %c0_i32 = arith.constant 0 : i32
    %c0_i32_0 = arith.constant 0 : i32
    return %arg0, %c0_i32 : i32, i32
  }
  func.func @transform_4(%arg0: i32) -> (i32, i32) {
    %c0_i32 = arith.constant 0 : i32
    %c0_i32_0 = arith.constant 0 : i32
    return %arg0, %c0_i32 : i32, i32
  }
  func.func @transform_5(%arg0: i32) -> (i32, i32) {
    %c0_i32 = arith.constant 0 : i32
    %c0_i32_0 = arith.constant 0 : i32
    return %arg0, %c0_i32 : i32, i32
  }
}

</mosaic_0001>

<bundles_post_ra>
// kernel: forward.1
= control target key start
LH: loop header
LB: loop body
LE: loop exit
PB: predicated region body
PF: predicated region fallthrough
CT: control target
= control target key end

     0   :  { %11 = vsyncpa [#allocation3], 0  ;;  %s302_s0 = inlined_call_operand.vmem [shape: f32[8,16], index: 0, kind: input, shape index: {}]   ;;  %s303_s1 = inlined_call_operand.hbm [shape: f32[16,32], index: 1, kind: input, shape index: {}]   ;;  %s304_s2 = inlined_call_operand.vmem [shape: f32[1,32], index: 2, kind: input, shape index: {}]   ;;  %s305_s3 = inlined_call_operand.hbm [shape: f32[8,32], index: 3, kind: input, shape index: {}]   ;;  %s306_s4 = inlined_call_operand.hbm [shape: f32[8,32], index: 4, kind: output, shape index: {0}]   ;;  %s307_s5 = inlined_call_operand.vmem [shape: f32[8,1], index: 5, kind: output, shape index: {1}]  }
   0x1   :  { %12 = vsyncpa [#allocation6], 0 }
   0x2   :  { %13 = vsyncpa [#allocation4], 0  ;;  %s247_s18 = smov [#allocation2]  }
   0x3   :  { %s21_s19 = sshll.u32 %s247_s18, 4  ;;  %s22_s19 = int_to_ptr.vmem [resolvable:$true] %s21_s19 }
   0x4   :  { %s189_s20 = scalar_lea.vmem %s22_s19, 256  ;;  %p194_p1 = scmp.lt.s32.totalorder %s22_s19, %s22_s19 }
   0x5   :  { %p190_p0 = scmp.ne.s32.totalorder %s22_s19, %s189_s20  ;;  %p195_p2 = scmp.lt.s32.totalorder %s189_s20, %s189_s20 }
   0x7   :  { %p196_p3 = por %p195_p2, %p194_p1 }
   0x9   :  { %p197_p4 = pnand %p196_p3, %p190_p0 }
   0xb   :  { %200 = shalt.err (!%p197_p4)
}
   0xc   :  { %s248_s21 = smov 128   ;;  %s249_s22 = smov 8  }
   0xd   :  { %27 = dma.hbm_to_vmem [thread:$0]  %s303_s1, 256, %s22_s19, [#allocation3], %s248_s21, %s248_s21, %s249_s22  }
   0xe   :  { %s250_s25 = smov [#allocation5]  }
   0xf   :  { %s36_s26 = sshll.u32 %s250_s25, 4  ;;  %s37_s26 = int_to_ptr.vmem [resolvable:$true] %s36_s26 }
  0x10   :  { %s209_s27 = scalar_lea.vmem %s37_s26, 128  ;;  %p214_p6 = scmp.lt.s32.totalorder %s37_s26, %s37_s26 }
  0x11   :  { %p210_p5 = scmp.ne.s32.totalorder %s37_s26, %s209_s27  ;;  %p215_p7 = scmp.lt.s32.totalorder %s209_s27, %s209_s27 }
  0x13   :  { %p216_p8 = por %p215_p7, %p214_p6 }
  0x15   :  { %p217_p9 = pnand %p216_p8, %p210_p5 }
  0x17   :  { %220 = shalt.err (!%p217_p9)
}
  0x18   :  { %39 = dma.hbm_to_vmem [thread:$0]  %s305_s3, 128, %s37_s26, [#allocation6]  }
  0x19   :  { %241 = dma.done.wait [#allocation3], 256  }
  0x1a   :  { %242 = vsyncadd [#allocation3], 4294967040 }
  0x1b   :  { %243 = dma.done.wait [#allocation6], 128  }
  0x1c   :  { %244 = vsyncadd [#allocation6], 4294967168  ;;  %v251_v0 = vmov 0.0   ;;  %vm252_vm0 = vmmov 0   ;;  %v48_v1 = vld [vmem:[#allocation2 + $0x8] sm:$0xff]  ;;  %v47_v2 = vld [vmem:[#allocation2] sm:$0xff] }
  0x1d   :  { %167 = vmatprep.subr.mxu0 %v251_v0  ;;  %171 = vmatprep.mubr.msk.f32.mxu0 %vm252_vm0, %v251_v0  ;;  %v46_v3 = vld [vmem:[%s302_s0] sm:$0xff]  ;;  %vm56_vm1 = vcmask 130048   ;;  %vm130_vm2 = vcmask 261120   ;;  %v132_v6 = vld [vmem:[#allocation5] sm:$0xff]  ;;  %s253_s7 = smov [#allocation7]  }
  0x1e   :  { %168 = vmatpush3.msra.mxu0 %v48_v1  ;;  %v162_v4 = vld [vmem:[%s304_s2] ss:$0 sm:$0xff]  ;;  %s148_s0 = sshll.u32 %s253_s7, 4  ;;  %s149_s0 = int_to_ptr.vmem [resolvable:$true] %s148_s0 }
  0x1f   :  { %169 = vmatprep.subr.mxu0 %v251_v0  ;;  %s221_s8 = scalar_lea.vmem %s149_s0, 128  ;;  %p226_p11 = scmp.lt.s32.totalorder %s149_s0, %s149_s0 }
  0x20   :  { %170 = vmatpush3.msra.mxu0 %v47_v2  ;;  %p222_p10 = scmp.ne.s32.totalorder %s149_s0, %s221_s8  ;;  %p227_p12 = scmp.lt.s32.totalorder %s221_s8, %s221_s8 }
  0x21   :  { %172 = vmatmul.mubr.msk.f32.vlgmr.msra.gmra.mxu0 %vm56_vm1, %v46_v3 }
  0x22   :  { %p228_p13 = por %p227_p12, %p226_p11 }
  0x24   :  { %p229_p0 = pnand %p228_p13, %p222_p10 }
  0xe1   :  { %v126_v5 = vpop.f32.mrf.mxu0 }
  0xe2   :  { %v127_v7 = vadd.f32 %v162_v4, %v126_v5 }
  0xe3   :  { %v173_v8 = vpop.f32.mrf.mxu0 }
  0xe4   :  { %v133_v9 = vsub.f32 %v127_v7, %v132_v6  ;;  %131 = vst.msk [vmem:[#allocation7] sm:$0xff] %vm130_vm2, %v127_v7 }
  0xe6   :  { %v134_v10 = vand.u32 2147483647, %v133_v9 }
  0xe8   :  { %v135_v11 = vsel %vm130_vm2, %v134_v10, 0.0 }
  0xe9   :  { %136 = vadd.xlane.f32.xlu0 %v135_v11 }
  0xea   :  { %232 = shalt.err (!%p229_p0)
}
  0xeb   :  { %151 = dma.vmem_to_hbm [thread:$0]  %s149_s0, 128, %s306_s4, [#allocation4]   ;;  %vm140_vm3 = vcmask 7168  }
 0x172   :  { %v137_v12 = vpop.xlane.xlu0 %136 }
 0x173   :  { %v139_v13 = vmul.f32 0.03125, %v137_v12 }
 0x175   :  { %141 = vst.msk [vmem:[%s307_s5] sm:$0xff] %vm140_vm3, %v139_v13 }
 0x176   :  { %245 = dma.done.wait [#allocation4], 128  }
 0x177   :  { %246 = vsyncadd [#allocation4], 4294967168 }
 0x178   :  { %159 = vsyncpa [#allocation3], 1 }
 0x179   :  { %160 = vsyncpa [#allocation6], 1 }
 0x17a   :  { %161 = vsyncpa [#allocation4], 1 }

</bundles_post_ra>
